<compile_context>
chip_gen: v7x
topology: tpu7x:2x2x1
jax: 0.10.0
libtpu: 0.0.40
codegen_flags: <defaults>
</compile_context>

<pallas_src>
import math
from functools import partial

import jax
import jax.numpy as jnp
from jax.experimental import pallas as pl
from jax.experimental.pallas import tpu as pltpu


# --------------------------------------------------------------------------- #
# Kernels
# --------------------------------------------------------------------------- #
def _gelu_f32(h, approximate):
    if approximate:
        # tanh-approx: exp/tanh land on the EUP slot instead of a long erf
        # VALU polynomial (changes numerics vs nn.GELU default; gated).
        return jax.nn.gelu(h, approximate=True)
    # exact GELU: 0.5 * h * (1 + erf(h / sqrt(2)))  -- matches nn.GELU default
    return 0.5 * h * (1.0 + jax.lax.erf(h * (1.0 / math.sqrt(2.0))))


def _ffn_resident_kernel(x_ref, w1_ref, w2_ref, o_ref, *, approximate):
    # Weights fully VMEM-resident; single grid axis over M tiles.
    h = jnp.dot(x_ref[...], w1_ref[...], preferred_element_type=jnp.float32)
    h = _gelu_f32(h, approximate)
    o_ref[...] = jnp.dot(h.astype(w2_ref.dtype), w2_ref[...],
                         preferred_element_type=jnp.float32).astype(o_ref.dtype)


def _ffn_streamed_kernel_scratch(x_ref, w1_ref, w2_ref, o_ref, acc_ref, *,
                                 approximate):
    # Streamed weights; f32 accumulator scratch (for non-f32 outputs).
    h_idx = pl.program_id(1)

    @pl.when(h_idx == 0)
    def _():
        acc_ref[...] = jnp.zeros_like(acc_ref)

    h = jnp.dot(x_ref[...], w1_ref[...], preferred_element_type=jnp.float32)
    h = _gelu_f32(h, approximate)
    acc_ref[...] += jnp.dot(h.astype(w2_ref.dtype), w2_ref[...],
                            preferred_element_type=jnp.float32)

    @pl.when(h_idx == pl.num_programs(1) - 1)
    def _():
        # Dropout(p=0.0) is the identity (module default / eval mode).
        o_ref[...] = acc_ref[...].astype(o_ref.dtype)


def _ffn_streamed_kernel_fp32out(x_ref, w1_ref, w2_ref, o_ref, *, approximate):
    # Streamed weights; accumulate directly into the VMEM-resident f32 output
    # block (its block index is constant across the H axis) -> no scratch.
    h_idx = pl.program_id(1)

    @pl.when(h_idx == 0)
    def _():
        o_ref[...] = jnp.zeros_like(o_ref)

    h = jnp.dot(x_ref[...], w1_ref[...], preferred_element_type=jnp.float32)
    h = _gelu_f32(h, approximate)
    o_ref[...] += jnp.dot(h.astype(w2_ref.dtype), w2_ref[...],
                          preferred_element_type=jnp.float32)


# --------------------------------------------------------------------------- #
# Generation-aware tile / VMEM selection
# --------------------------------------------------------------------------- #
def _round_up(a, b):
    return (a + b - 1) // b * b


def _tpu_generation():
    try:
        kind = jax.devices()[0].device_kind.lower()
    except Exception:
        return "unknown"
    if "v5e" in kind or "v5 lite" in kind or "v5lite" in kind:
        return "v5e"
    if "v6" in kind:
        return "v6e"
    if "v7" in kind:
        return "v7x"
    return "unknown"


# tm_target: M-tile for roofline (re-streamed weights give ~tm FLOP/byte).
# align:     H-chunk alignment (MXU native tile: 128 on v5e, 256 on v6e/v7x).
# vmem_cap:  max vmem_limit_bytes request (v5e/v6e: 128 MiB physical;
#            v7x: 64 MiB physical, cap at ~50 MiB for compiler headroom).
_GEN_CFG = {
    "v5e":     dict(tm_target=512,  align=128, vmem_cap=100 << 20, min_m_tiles=1),
    "v6e":     dict(tm_target=1024, align=256, vmem_cap=100 << 20, min_m_tiles=1),
    "v7x":     dict(tm_target=512,  align=256, vmem_cap=50 << 20,  min_m_tiles=2),
    "unknown": dict(tm_target=512,  align=128, vmem_cap=48 << 20,  min_m_tiles=1),
}


def _pick_h_chunk(total, target, align):
    """Largest divisor of `total` that is <= target and a multiple of `align`;
    falls back to `total` (whole axis) if none exists."""
    if total <= target or total % align != 0:
        return total
    start = min(target, total)
    start -= start % align
    for cand in range(start, 0, -align):
        if total % cand == 0:
            return cand
    return total


def _est_resident(tm, C, H, cd, od):
    return (2 * tm * C * cd      # x tile (double-buffered)
            + 2 * C * H * cd     # W1 (double-buffered by default)
            + 2 * H * C * cd     # W2 (double-buffered by default)
            + 2 * tm * C * od    # output tile (double-buffered)
            + tm * H * 4         # f32 hidden intermediate
            + tm * H * cd)       # bf16 cast temp of hidden


def _est_streamed(tm, hk, C, H, cd, od):
    return (2 * tm * C * cd
            + 2 * C * hk * cd
            + 2 * hk * C * cd
            + 2 * tm * C * od
            + tm * C * 4         # f32 accumulator (scratch or resident out)
            + tm * hk * 4        # f32 hidden chunk
            + tm * hk * cd)      # bf16 cast temp


def _choose_tiles(M, C, H, cd, od, cfg):
    """Return (tm, hk); hk == H means the resident-weight path."""
    tm_target = cfg["tm_target"]
    budget = int(cfg["vmem_cap"] * 0.85)

    if M >= tm_target:
        tm = tm_target
        # Keep >= min_m_tiles M-tiles so the parallel axis feeds all cores.
        while (cfg["min_m_tiles"] > 1 and pl.cdiv(M, tm) < cfg["min_m_tiles"]
               and tm > 256):
            tm //= 2
        # Prefer fully VMEM-resident weights (weights DMA'd once per kernel).
        cand = tm
        while cand >= 128:
            if _est_resident(cand, C, H, cd, od) <= budget:
                return cand, H
            cand //= 2
    else:
        tm = _round_up(M, 8)
        if _est_resident(tm, C, H, cd, od) <= budget:
            return tm, H

    # Streamed-weight fallback: biggest aligned H chunk that fits.
    hk = H
    for target in (2048, 1024, 512, 256, 128):
        hk = _pick_h_chunk(H, target=target, align=cfg["align"])
        if _est_streamed(tm, hk, C, H, cd, od) <= budget:
            return tm, hk
    # Last resort: shrink tm (keep multiple of 8).
    while tm > 128 and _est_streamed(tm, hk, C, H, cd, od) > budget:
        tm = _round_up(max(128, tm // 2), 8)
    return tm, hk


# --------------------------------------------------------------------------- #
# Wrapper
# --------------------------------------------------------------------------- #
def feedforward_pallas(x, w1, w2, *, tm=None, hk=None,
                       compute_dtype=jnp.bfloat16, gelu_approximate=False):
    """x: (B, T, C); w1: (C, 4C); w2: (4C, C) -> (B, T, C).

    Pre-cast w1/w2 to `compute_dtype` outside the hot path when possible: the
    wrapper skips the per-call cast if dtypes already match.
    """
    B, T, C = x.shape
    H = w1.shape[1]
    assert w1.shape == (C, H) and w2.shape == (H, C)

    out_dtype = x.dtype
    M = B * T
    x2d = x.reshape(M, C)

    cfg = _GEN_CFG.get(_tpu_generation(), _GEN_CFG["unknown"])
    cd = jnp.dtype(compute_dtype).itemsize
    od = jnp.dtype(out_dtype).itemsize

    auto_tm, auto_hk = _choose_tiles(M, C, H, cd, od, cfg)
    if tm is None:
        tm = auto_tm
    if hk is None:
        hk = auto_hk
    assert H % hk == 0
    resident = (hk == H)

    # ---- ragged-M handling: pad rows up to a multiple of tm -----------------
    M_pad = _round_up(M, tm)
    if M_pad != M:
        x2d = jnp.pad(x2d, ((0, M_pad - M), (0, 0)))

    # bf16 MXU path (f32 accumulation inside the kernel). Skip redundant casts.
    x2d_c = x2d if x2d.dtype == compute_dtype else x2d.astype(compute_dtype)
    w1_c = w1 if w1.dtype == compute_dtype else w1.astype(compute_dtype)
    w2_c = w2 if w2.dtype == compute_dtype else w2.astype(compute_dtype)

    # ---- VMEM budget / cost estimate ----------------------------------------
    if resident:
        vmem_est = _est_resident(tm, C, H, cd, od)
        weight_streams = 1                       # weights DMA'd once
    else:
        vmem_est = _est_streamed(tm, hk, C, H, cd, od)
        weight_streams = M_pad // tm             # re-streamed per M tile
    vmem_limit = int(min(cfg["vmem_cap"],
                         max(32 << 20, int(1.3 * vmem_est) + (2 << 20))))

    cost = pl.CostEstimate(
        flops=4 * M_pad * C * H,                         # two matmuls
        transcendentals=M_pad * H,                       # GELU (advisory)
        bytes_accessed=(M_pad * C * cd                   # x
                        + weight_streams * 2 * C * H * cd  # weights
                        + M_pad * C * od),               # output
    )

    # ---- grid / specs --------------------------------------------------------
    if resident:
        grid = (M_pad // tm,)
        kernel = partial(_ffn_resident_kernel, approximate=gelu_approximate)
        in_specs = [
            pl.BlockSpec((tm, C), lambda i: (i, 0)),   # x rows tile
            pl.BlockSpec((C, H), lambda i: (0, 0)),    # W1, constant block
            pl.BlockSpec((H, C), lambda i: (0, 0)),    # W2, constant block
        ]
        out_specs = pl.BlockSpec((tm, C), lambda i: (i, 0))
        scratch_shapes = []
        dim_sem = ("parallel",)
    else:
        grid = (M_pad // tm, H // hk)
        in_specs = [
            pl.BlockSpec((tm, C), lambda i, h: (i, 0)),   # x rows tile
            pl.BlockSpec((C, hk), lambda i, h: (0, h)),   # W1 column chunk
            pl.BlockSpec((hk, C), lambda i, h: (h, 0)),   # W2 row chunk
        ]
        out_specs = pl.BlockSpec((tm, C), lambda i, h: (i, 0))
        dim_sem = ("parallel", "arbitrary")
        if out_dtype == jnp.float32:
            kernel = partial(_ffn_streamed_kernel_fp32out,
                             approximate=gelu_approximate)
            scratch_shapes = []
        else:
            kernel = partial(_ffn_streamed_kernel_scratch,
                             approximate=gelu_approximate)
            scratch_shapes = [pltpu.VMEM((tm, C), jnp.float32)]

    out2d = pl.pallas_call(
        kernel,
        out_shape=jax.ShapeDtypeStruct((M_pad, C), out_dtype),
        grid_spec=pltpu.PrefetchScalarGridSpec(
            num_scalar_prefetch=0,
            grid=grid,
            in_specs=in_specs,
            out_specs=out_specs,
            scratch_shapes=scratch_shapes,
        ),
        compiler_params=pltpu.CompilerParams(
            dimension_semantics=dim_sem,
            vmem_limit_bytes=vmem_limit,
        ),
        cost_estimate=cost,
    )(x2d_c, w1_c, w2_c)

    if M_pad != M:
        out2d = out2d[:M]
    return out2d.reshape(B, T, C)


# --------------------------------------------------------------------------- #
# Reference / test harness
# --------------------------------------------------------------------------- #
def _init_linear_weight(key, in_features, out_features):
    # PyTorch nn.Linear default init: U(-1/sqrt(in), 1/sqrt(in)) on weight
    # (stored (out, in)); kept transposed as (in, out) for x @ W.
    bound = 1.0 / math.sqrt(in_features)
    w = jax.random.uniform(key, (out_features, in_features),
                           minval=-bound, maxval=bound, dtype=jnp.float32)
    return w.T  # (in, out)


def feedforward_reference(x, w1, w2, compute_dtype=jnp.bfloat16):
    # Emulates the kernel's numerics: bf16 matmul inputs, f32 accumulation,
    # exact-erf GELU in f32.
    xb = x.astype(compute_dtype)
    w1b = w1.astype(compute_dtype)
    w2b = w2.astype(compute_dtype)
    h = jnp.einsum("btc,ch->bth", xb, w1b,
                   preferred_element_type=jnp.float32)
    h = 0.5 * h * (1.0 + jax.lax.erf(h / math.sqrt(2.0)))
    out = jnp.einsum("bth,hc->btc", h.astype(compute_dtype), w2b,
                     preferred_element_type=jnp.float32)
    return out.astype(x.dtype)


if __name__ == "__main__":
    # Small config consistent with the module: n_embd=32 -> hidden=4*32=128.
    # Note: C=32 (<128 lanes) is a functional-test shape only; real configs
    # (n_embd=384+) are 128-aligned and hit the lane-dense fast path.
    B, T, C = 2, 8, 32
    H = 4 * C

    key = jax.random.PRNGKey(0)
    kx, k1, k2 = jax.random.split(key, 3)

    x = jax.random.normal(kx, (B, T, C), dtype=jnp.float32)
    w1 = _init_linear_weight(k1, C, H)   # (C, 4C)
    w2 = _init_linear_weight(k2, H, C)   # (4C, C)

    # Pre-cast weights once outside the hot path (avoids a per-call HBM
    # convert of the full weight matrices).
    w1_bf = w1.astype(jnp.bfloat16)
    w2_bf = w2.astype(jnp.bfloat16)

    out = feedforward_pallas(x, w1_bf, w2_bf)
    out = jax.block_until_ready(out)

    ref = feedforward_reference(x, w1, w2)
    assert out.shape == (B, T, C)
    assert jnp.allclose(out, ref, atol=1e-2, rtol=1e-2), "mismatch vs reference"

    # TODO(synk): nn.Dropout with p > 0 (training-mode RNG masking) is not
    # implemented; the module/config default p=0.0 makes it the identity.
    print("KERNEL_OK")
</pallas_src>

<mosaic_0001>
module attributes {stable_mosaic.version = 11 : i64} {
  func.func @_ffn_resident_kernel(%arg0: i32, %arg1: memref<16x32xbf16, #tpu.memory_space<vmem>>, %arg2: memref<32x128xbf16, #tpu.memory_space<vmem>>, %arg3: memref<128x32xbf16, #tpu.memory_space<vmem>>, %arg4: memref<16x32xf32, #tpu.memory_space<vmem>>) attributes {dimension_semantics = [#tpu.dimension_semantics<parallel>], iteration_bounds = array<i64: 1>, scalar_prefetch = 0 : i64, scratch_operands = 0 : i64, tpu.core_type = #tpu.core_type<tc>, window_params = [{transform_indices = @transform_0, window_bounds = array<i64: 16, 32>}, {pipeline_mode = #tpu.pipeline_mode<synchronous>, transform_indices = @transform_1, window_bounds = array<i64: 32, 128>}, {pipeline_mode = #tpu.pipeline_mode<synchronous>, transform_indices = @transform_2, window_bounds = array<i64: 128, 32>}, {transform_indices = @transform_3, window_bounds = array<i64: 16, 32>}]} {
    %c0 = arith.constant 0 : index
    %c0_0 = arith.constant 0 : index
    %0 = vector.load %arg1[%c0, %c0_0] : memref<16x32xbf16, #tpu.memory_space<vmem>>, vector<16x32xbf16>
    %c0_1 = arith.constant 0 : index
    %c0_2 = arith.constant 0 : index
    %1 = vector.load %arg2[%c0_1, %c0_2] : memref<32x128xbf16, #tpu.memory_space<vmem>>, vector<32x128xbf16>
    %cst = arith.constant dense<0.000000e+00> : vector<16x128xf32>
    %2 = tpu.matmul %0, %1, %cst {dimension_numbers = #tpu.dot_dimension_numbers<[1], [0], [0], [1], [0, 0, 1, 1], [], []>} : vector<16x32xbf16>, vector<32x128xbf16>, vector<16x128xf32> -> vector<16x128xf32>
    %cst_3 = arith.constant 5.000000e-01 : f32
    %3 = vector.broadcast %cst_3 : f32 to vector<16x128xf32>
    %4 = arith.mulf %3, %2 : vector<16x128xf32>
    %cst_4 = arith.constant 0.707106769 : f32
    %5 = vector.broadcast %cst_4 : f32 to vector<16x128xf32>
    %6 = arith.mulf %2, %5 : vector<16x128xf32>
    %7 = math.erf %6 : vector<16x128xf32>
    %cst_5 = arith.constant 1.000000e+00 : f32
    %8 = vector.broadcast %cst_5 : f32 to vector<16x128xf32>
    %9 = arith.addf %8, %7 : vector<16x128xf32>
    %10 = arith.mulf %4, %9 : vector<16x128xf32>
    %11 = arith.truncf %10 : vector<16x128xf32> to vector<16x128xbf16>
    %c0_6 = arith.constant 0 : index
    %c0_7 = arith.constant 0 : index
    %12 = vector.load %arg3[%c0_6, %c0_7] : memref<128x32xbf16, #tpu.memory_space<vmem>>, vector<128x32xbf16>
    %cst_8 = arith.constant dense<0.000000e+00> : vector<16x32xf32>
    %13 = tpu.matmul %11, %12, %cst_8 {dimension_numbers = #tpu.dot_dimension_numbers<[1], [0], [0], [1], [0, 0, 1, 1], [], []>} : vector<16x128xbf16>, vector<128x32xbf16>, vector<16x32xf32> -> vector<16x32xf32>
    %c0_9 = arith.constant 0 : index
    %c0_10 = arith.constant 0 : index
    %14 = vector.load %arg4[%c0_9, %c0_10] : memref<16x32xf32, #tpu.memory_space<vmem>>, vector<16x32xf32>
    tpu.vector_store %arg4[%c0_9, %c0_10], %13 {strides = array<i32>} : memref<16x32xf32, #tpu.memory_space<vmem>>, vector<16x32xf32>,
    return
  }
  func.func @transform_0(%arg0: i32) -> (i32, i32) {
    %c0_i32 = arith.constant 0 : i32
    %c0_i32_0 = arith.constant 0 : i32
    return %arg0, %c0_i32 : i32, i32
  }
  func.func @transform_1(%arg0: i32) -> (i32, i32) {
    %c0_i32 = arith.constant 0 : i32
    %c0_i32_0 = arith.constant 0 : i32
    %c0_i32_1 = arith.constant 0 : i32
    return %c0_i32, %c0_i32_0 : i32, i32
  }
  func.func @transform_2(%arg0: i32) -> (i32, i32) {
    %c0_i32 = arith.constant 0 : i32
    %c0_i32_0 = arith.constant 0 : i32
    %c0_i32_1 = arith.constant 0 : i32
    return %c0_i32, %c0_i32_0 : i32, i32
  }
  func.func @transform_3(%arg0: i32) -> (i32, i32) {
    %c0_i32 = arith.constant 0 : i32
    %c0_i32_0 = arith.constant 0 : i32
    return %arg0, %c0_i32 : i32, i32
  }
}

</mosaic_0001>

<bundles_post_ra>
// kernel: tpu_custom_call.1
= control target key start
LH: loop header
LB: loop body
LE: loop exit
PB: predicated region body
PF: predicated region fallthrough
CT: control target
= control target key end

     0   :  { %v314_v1 = vmov 0.0   ;;  %vm315_vm0 = vmmov 0   ;;  %vm39_vm1 = vcmask 261120   ;;  %s387_s0 = inlined_call_operand.vmem [shape: bf16[16,32], index: 0, kind: input, shape index: {}]   ;;  %s388_s1 = inlined_call_operand.vmem [shape: bf16[32,128], index: 1, kind: input, shape index: {}]   ;;  %s389_s2 = inlined_call_operand.vmem [shape: bf16[128,32], index: 2, kind: input, shape index: {}]   ;;  %s390_s3 = inlined_call_operand.hbm [shape: f32[16,32], index: 3, kind: output, shape index: {}]  }
   0x1   :  { %v275_v0 = vld [vmem:[%s388_s1] sm:$0xff]   ;;  %242 = vmatprep.subr.bf16.mxu0 %v314_v1  ;;  %250 = vmatprep.subr.bf16.mxu1 %v314_v1  ;;  %v276_v2 = vld [vmem:[%s388_s1 + $0x8] sm:$0xff]   ;;  %v280_v6 = vld [vmem:[%s389_s2 + $0x10] sm:$0xff]  }
   0x2   :  { %243 = vmatpush3.bf16.msra.mxu0 %v275_v0  ;;  %246 = vmatprep.mubr.msk.bf16.mxu0 %vm315_vm0, %v314_v1  ;;  %v278_v3 = vld [vmem:[%s389_s2] sm:$0xff]   ;;  %v279_v5 = vld [vmem:[%s389_s2 + $0x8] sm:$0xff]  }
   0x3   :  { %244 = vmatprep.subr.bf16.mxu0 %v314_v1  ;;  %266 = vmatprep.mubr.msk.bf16.mxu1 %vm315_vm0, %v314_v1  ;;  %v277_v4 = vld [vmem:[%s387_s0] sm:$0xff]  }
   0x4   :  { %251 = vmatpush3.bf16.msra.mxu1 %v278_v3 }
   0x5   :  { %252 = vmatprep.subr.bf16.mxu1 %v314_v1 }
   0x6   :  { %245 = vmatpush3.bf16.msra.mxu0 %v276_v2 }
   0x8   :  { %253 = vmatpush3.bf16.msra.mxu1 %v279_v5 }
   0x9   :  { %247 = vmatmul.mubr.msk.bf16.vlgmr.msra.gmra.mrb[0].mxu0 %vm39_vm1, %v277_v4 }
   0xa   :  { %8 = vsyncpa [#allocation3], 0  ;;  %254 = vmatprep.subr.bf16.mxu1 %v314_v1  ;;  %v281_v7 = vld [vmem:[%s389_s2 + $0x18] sm:$0xff]   ;;  %v282_v8 = vld [vmem:[%s389_s2 + $0x20] sm:$0xff]  }
   0xb   :  { %v283_v9 = vld [vmem:[%s389_s2 + $0x28] sm:$0xff]   ;;  %v284_v10 = vld [vmem:[%s389_s2 + $0x30] sm:$0xff]   ;;  %v285_v11 = vld [vmem:[%s389_s2 + $0x38] sm:$0xff]   ;;  %s316_s2 = smov [#allocation2]  }
   0xc   :  { %255 = vmatpush3.bf16.msra.mxu1 %v280_v6  ;;  %s207_s5 = sshll.u32 %s316_s2, 4  ;;  %s208_s5 = int_to_ptr.vmem [resolvable:$true] %s207_s5 }
   0xd   :  { %256 = vmatprep.subr.bf16.mxu1 %v314_v1  ;;  %s290_s6 = scalar_lea.vmem %s208_s5, 256  ;;  %p295_p1 = scmp.lt.s32.totalorder %s208_s5, %s208_s5 }
   0xe   :  { %p291_p0 = scmp.ne.s32.totalorder %s208_s5, %s290_s6  ;;  %p296_p2 = scmp.lt.s32.totalorder %s290_s6, %s290_s6 }
  0x10   :  { %257 = vmatpush3.bf16.msra.mxu1 %v281_v7  ;;  %p297_p3 = por %p296_p2, %p295_p1 }
  0x11   :  { %258 = vmatprep.subr.bf16.mxu1 %v314_v1 }
  0x12   :  { %p298_p4 = pnand %p297_p3, %p291_p0 }
  0x14   :  { %259 = vmatpush3.bf16.msra.mxu1 %v282_v8 }
  0x15   :  { %260 = vmatprep.subr.bf16.mxu1 %v314_v1 }
  0x18   :  { %261 = vmatpush3.bf16.msra.mxu1 %v283_v9 }
  0x19   :  { %262 = vmatprep.subr.bf16.mxu1 %v314_v1 }
  0x1c   :  { %263 = vmatpush3.bf16.msra.mxu1 %v284_v10 }
  0x1d   :  { %264 = vmatprep.subr.bf16.mxu1 %v314_v1 }
  0x20   :  { %265 = vmatpush3.bf16.msra.mxu1 %v285_v11 }
  0xdc   :  { %v77_v12 = vpop.f32.mrb[0].mxu0 }
  0xdd   :  { %v86_v13 = vmul.f32 0.70710677, %v77_v12  ;;  %v248_v14 = vpop.f32.mrb[1].mxu0  ;;  %v84_v21 = vmul.f32 0.5, %v77_v12 }
  0xde   :  { %v80_v15 = vpop.f32.mrb[2].mxu0 }
  0xdf   :  { %286 = verf.f32 %v86_v13  ;;  %v87_v16 = vmul.f32 0.70710677, %v80_v15  ;;  %v249_v17 = vpop.f32.mrb[3].mxu0  ;;  %v85_v22 = vmul.f32 0.5, %v80_v15 }
  0xe1   :  { %288 = verf.f32 %v87_v16 }
  0xe9   :  { %v287_v18 = vpop.eup %286 }
  0xea   :  { %v90_v19 = vadd.f32 1.0, %v287_v18 }
  0xeb   :  { %v289_v20 = vpop.eup %288 }
  0xec   :  { %v91_v23 = vadd.f32 1.0, %v289_v20  ;;  %v92_v24 = vmul.f32 %v90_v19, %v84_v21 }
  0xee   :  { %v93_v25 = vmul.f32 %v91_v23, %v85_v22 }
  0xf0   :  { %v94_v26 = vpack.c.bf16 %v93_v25, %v92_v24 }
  0xf2   :  { %267 = vmatmul.mubr.bf16.vlgmr.msra.gmra.mrb[0].mxu1 %v94_v26 }
 0x1c5   :  { %v193_v27 = vpop.f32.mrb[0].mxu1 }
 0x1c6   :  { %200 = vst.msk [vmem:[#allocation2] sm:$0xff] %vm39_vm1, %v193_v27  ;;  %v268_v28 = vpop.f32.mrb[1].mxu1 }
 0x1c7   :  { %v196_v29 = vpop.f32.mrb[2].mxu1 }
 0x1c8   :  { %201 = vst.msk [vmem:[#allocation2 + $0x8] sm:$0xff] %vm39_vm1, %v196_v29  ;;  %v269_v30 = vpop.f32.mrb[3].mxu1 }
 0x1c9   :  { %301 = shalt.err (!%p298_p4)
}
 0x1ca   :  { %s302_s9 = scalar_lea.hbm %s390_s3, 256 }
 0x1cb   :  { %p303_p5 = scmp.ne.s32.totalorder %s390_s3, %s302_s9  ;;  %p306_p6 = scmp.lt.u32.totalorder %s302_s9, %s390_s3 }
 0x1cd   :  { %p308_p7 = pnand %p306_p6, %p303_p5 }
 0x1cf   :  { %311 = shalt.err (!%p308_p7)
}
 0x1d0   :  { %s317_s14 = smov 128   ;;  %s318_s15 = smov 8  }
 0x1d1   :  { %213 = dma.vmem_to_hbm [thread:$0]  %s208_s5, 256, %s390_s3, [#allocation3], %s317_s14, %s317_s14, %s318_s15  }
 0x1d2   :  { %312 = dma.done.wait [#allocation3], 256  }
 0x1d3   :  { %313 = vsyncadd [#allocation3], 4294967040 }
 0x1d4   :  { %217 = vsyncpa [#allocation3], 1 }

</bundles_post_ra>
